<compile_context>
chip_gen: v7x
topology: tpu7x:2x2x1
jax: 0.10.0
libtpu: 0.0.40
codegen_flags: <defaults>
</compile_context>

<pallas_src>
import functools

import jax
import jax.numpy as jnp
from jax.experimental import pallas as pl
from jax.experimental.pallas import tpu as pltpu


def _glm_kernel(cov_ref, par_ref, out_ref, *, covariates_size, output_size):
    """cov_ref: (tr, C), par_ref: (tr, O*C) in [o*C + c] order, out_ref: (tr, O)."""
    C, O = covariates_size, output_size
    cov = cov_ref[...].astype(jnp.float32)                         # (tr, C)
    cols = []
    for o in range(O):                                             # static, O is small
        p_o = par_ref[:, o * C:(o + 1) * C].astype(jnp.float32)    # (tr, C) lane slice
        cols.append(jnp.sum(p_o * cov, axis=-1, keepdims=True))    # (tr, 1) lane reduce
    out = cols[0] if O == 1 else jnp.concatenate(cols, axis=-1)    # (tr, O)
    out_ref[...] = out.astype(out_ref.dtype)


def generalized_linear_model(covariates, params, *, output_size=1,
                             invlink_fn=None,
                             target_tile_bytes=2 * 1024 * 1024):
    """Pallas forward of GeneralizedLinearModel.

    covariates: (B, S, C), params: (B, S, C*output_size) -> (B, S, output_size)
    """
    B, S, C = covariates.shape
    P = params.shape[2]
    if P != C * output_size:
        raise ValueError("we need one parameter per covariate and output dimension")
    O = output_size
    R = B * S
    out_dtype = jnp.result_type(covariates.dtype, params.dtype)

    # Free reshapes (no extra HBM pass) for the lane-dense 2D slabs.
    cov2d = covariates.reshape(R, C)
    if O == 1:
        par2d = params.reshape(R, C)
    else:
        # Reorder once so each output's parameters are lane-contiguous: [r, o*C + c].
        par2d = params.reshape(R, C, O).transpose(0, 2, 1).reshape(R, O * C)

    # Row tile: ~2 MiB of streamed bytes per grid step, multiple of 8 sublanes.
    itemsize = jnp.dtype(covariates.dtype).itemsize
    bytes_per_row = (C + O * C + O) * itemsize
    tr = max(8, target_tile_bytes // max(1, bytes_per_row))
    tr = max(8, (tr // 8) * 8)
    if tr >= R:
        tr = R                      # single full-extent block over the row dim
    grid = (pl.cdiv(R, tr),)        # ragged last block handled by Pallas masking

    kernel = functools.partial(_glm_kernel, covariates_size=C, output_size=O)

    out2d = pl.pallas_call(
        kernel,
        out_shape=jax.ShapeDtypeStruct((R, O), out_dtype),
        grid_spec=pltpu.PrefetchScalarGridSpec(
            num_scalar_prefetch=0,
            grid=grid,
            in_specs=[
                pl.BlockSpec((tr, C), lambda i: (i, 0)),
                pl.BlockSpec((tr, O * C), lambda i: (i, 0)),
            ],
            out_specs=pl.BlockSpec((tr, O), lambda i: (i, 0)),
        ),
        compiler_params=pltpu.CompilerParams(
            dimension_semantics=("parallel",),   # rows are independent -> megacore split
        ),
    )(cov2d, par2d)

    out = out2d.reshape(B, S, O)
    # Default inverse link is Identity (no-op). A custom elementwise link could be
    # fused into the kernel epilogue; here it is applied in the wrapper if given.
    if invlink_fn is not None:
        out = invlink_fn(out)
    return out


if __name__ == "__main__":
    key = jax.random.PRNGKey(0)
    k1, k2, k3, k4 = jax.random.split(key, 4)

    # Default module config: output_size=1, identity inverse link.
    B, S, C = 2, 8, 32
    covariates = jax.random.normal(k1, (B, S, C), dtype=jnp.float32)
    params = jax.random.normal(k2, (B, S, C * 1), dtype=jnp.float32)

    y = generalized_linear_model(covariates, params, output_size=1)
    y = jax.block_until_ready(y)

    ref = jnp.sum(params.reshape(B, S, C, 1) * covariates[..., None], axis=-2)
    assert y.shape == (B, S, 1) and y.dtype == covariates.dtype
    assert jnp.max(jnp.abs(y - ref)) < 1e-4

    # Also exercise the multi-output path (output_size=3).
    O = 3
    cov2 = jax.random.normal(k3, (B, S, C), dtype=jnp.float32)
    par2 = jax.random.normal(k4, (B, S, C * O), dtype=jnp.float32)
    y2 = jax.block_until_ready(generalized_linear_model(cov2, par2, output_size=O))
    ref2 = jnp.sum(par2.reshape(B, S, C, O) * cov2[..., None], axis=-2)
    assert y2.shape == (B, S, O)
    assert jnp.max(jnp.abs(y2 - ref2)) < 1e-4

    print("KERNEL_OK")
</pallas_src>

<mosaic_0001>
module attributes {stable_mosaic.version = 11 : i64} {
  func.func @_glm_kernel(%arg0: i32, %arg1: memref<16x32xf32, #tpu.memory_space<vmem>>, %arg2: memref<16x32xf32, #tpu.memory_space<vmem>>, %arg3: memref<16x1xf32, #tpu.memory_space<vmem>>) attributes {dimension_semantics = [#tpu.dimension_semantics<parallel>], iteration_bounds = array<i64: 1>, scalar_prefetch = 0 : i64, scratch_operands = 0 : i64, tpu.core_type = #tpu.core_type<tc>, window_params = [{transform_indices = @transform_0, window_bounds = array<i64: 16, 32>}, {transform_indices = @transform_1, window_bounds = array<i64: 16, 32>}, {transform_indices = @transform_2, window_bounds = array<i64: 16, 1>}]} {
    %c0 = arith.constant 0 : index
    %c0_0 = arith.constant 0 : index
    %0 = vector.load %arg1[%c0, %c0_0] : memref<16x32xf32, #tpu.memory_space<vmem>>, vector<16x32xf32>
    %c0_1 = arith.constant 0 : index
    %c0_2 = arith.constant 0 : index
    %1 = vector.load %arg2[%c0_1, %c0_2] : memref<16x32xf32, #tpu.memory_space<vmem>>, vector<16x32xf32>
    %2 = arith.mulf %1, %0 : vector<16x32xf32>
    %cst = arith.constant dense<0.000000e+00> : vector<16xf32>
    %3 = vector.multi_reduction <add>, %2, %cst [1] : vector<16x32xf32> to vector<16xf32>
    %4 = vector.shape_cast %3 : vector<16xf32> to vector<16x1xf32>
    %c0_3 = arith.constant 0 : index
    %c0_4 = arith.constant 0 : index
    %5 = vector.load %arg3[%c0_3, %c0_4] : memref<16x1xf32, #tpu.memory_space<vmem>>, vector<16x1xf32>
    tpu.vector_store %arg3[%c0_3, %c0_4], %4 {strides = array<i32>} : memref<16x1xf32, #tpu.memory_space<vmem>>, vector<16x1xf32>,
    return
  }
  func.func @transform_0(%arg0: i32) -> (i32, i32) {
    %c0_i32 = arith.constant 0 : i32
    %c0_i32_0 = arith.constant 0 : i32
    return %arg0, %c0_i32 : i32, i32
  }
  func.func @transform_1(%arg0: i32) -> (i32, i32) {
    %c0_i32 = arith.constant 0 : i32
    %c0_i32_0 = arith.constant 0 : i32
    return %arg0, %c0_i32 : i32, i32
  }
  func.func @transform_2(%arg0: i32) -> (i32, i32) {
    %c0_i32 = arith.constant 0 : i32
    %c0_i32_0 = arith.constant 0 : i32
    return %arg0, %c0_i32 : i32, i32
  }
}

</mosaic_0001>

<bundles_post_ra>
// kernel: tpu_custom_call.1
= control target key start
LH: loop header
LB: loop body
LE: loop exit
PB: predicated region body
PF: predicated region fallthrough
CT: control target
= control target key end

     0   :  { %7 = vsyncpa [#allocation3], 0  ;;  %s162_s0 = inlined_call_operand.hbm [shape: f32[16,32], index: 0, kind: input, shape index: {}]   ;;  %s163_s1 = inlined_call_operand.hbm [shape: f32[16,32], index: 1, kind: input, shape index: {}]   ;;  %s164_s2 = inlined_call_operand.vmem [shape: f32[16,1], index: 2, kind: output, shape index: {}]  }
   0x1   :  { %8 = vsyncpa [#allocation5], 0  ;;  %s113_s9 = smov [#allocation2]   ;;  %s65_s13 = scalar_lea.hbm %s162_s0, 256 }
   0x2   :  { %s14_s10 = sshll.u32 %s113_s9, 4  ;;  %p66_p0 = scmp.ne.s32.totalorder %s162_s0, %s65_s13  ;;  %s15_s10 = int_to_ptr.vmem [resolvable:$true] %s14_s10 }
   0x3   :  { %p69_p1 = scmp.lt.u32.totalorder %s65_s13, %s162_s0 }
   0x5   :  { %p71_p2 = pnand %p69_p1, %p66_p0 }
   0x7   :  { %74 = shalt.err (!%p71_p2)
}
   0x8   :  { %s75_s18 = scalar_lea.vmem %s15_s10, 256  ;;  %p80_p4 = scmp.lt.s32.totalorder %s15_s10, %s15_s10 }
   0x9   :  { %p76_p3 = scmp.ne.s32.totalorder %s15_s10, %s75_s18  ;;  %p81_p5 = scmp.lt.s32.totalorder %s75_s18, %s75_s18 }
   0xb   :  { %p82_p6 = por %p81_p5, %p80_p4 }
   0xd   :  { %p83_p7 = pnand %p82_p6, %p76_p3 }
   0xf   :  { %86 = shalt.err (!%p83_p7)
}
  0x10   :  { %s114_s19 = smov 128   ;;  %s115_s20 = smov 8  }
  0x11   :  { %20 = dma.hbm_to_vmem [thread:$0]  %s162_s0, 256, %s15_s10, [#allocation3], %s114_s19, %s114_s19, %s115_s20  }
  0x12   :  { %s116_s23 = smov [#allocation4]   ;;  %s87_s27 = scalar_lea.hbm %s163_s1, 256 }
  0x13   :  { %s26_s24 = sshll.u32 %s116_s23, 4  ;;  %p88_p8 = scmp.ne.s32.totalorder %s163_s1, %s87_s27  ;;  %s27_s24 = int_to_ptr.vmem [resolvable:$true] %s26_s24 }
  0x14   :  { %p91_p9 = scmp.lt.u32.totalorder %s87_s27, %s163_s1 }
  0x16   :  { %p93_p10 = pnand %p91_p9, %p88_p8 }
  0x18   :  { %96 = shalt.err (!%p93_p10)
}
  0x19   :  { %s97_s4 = scalar_lea.vmem %s27_s24, 256  ;;  %p102_p12 = scmp.lt.s32.totalorder %s27_s24, %s27_s24 }
  0x1a   :  { %p98_p11 = scmp.ne.s32.totalorder %s27_s24, %s97_s4  ;;  %p103_p13 = scmp.lt.s32.totalorder %s97_s4, %s97_s4 }
  0x1c   :  { %p104_p0 = por %p103_p13, %p102_p12 }
  0x1e   :  { %p105_p1 = pnand %p104_p0, %p98_p11 }
  0x20   :  { %108 = shalt.err (!%p105_p1)
}
  0x21   :  { %32 = dma.hbm_to_vmem [thread:$0]  %s163_s1, 256, %s27_s24, [#allocation5], %s114_s19, %s114_s19, %s115_s20  }
  0x22   :  { %109 = dma.done.wait [#allocation3], 256  }
  0x23   :  { %110 = vsyncadd [#allocation3], 4294967040 }
  0x24   :  { %111 = dma.done.wait [#allocation5], 256  }
  0x25   :  { %112 = vsyncadd [#allocation5], 4294967040  ;;  %v39_v0 = vld [vmem:[#allocation2] sm:$0xff]  ;;  %v41_v1 = vld [vmem:[#allocation4] sm:$0xff]  ;;  %vm45_vm0 = vcmask 261120   ;;  %vm52_vm1 = vcmask 7168  }
  0x26   :  { %v40_v2 = vld [vmem:[#allocation2 + $0x8] sm:$0xff]  ;;  %v43_v3 = vmul.f32 %v41_v1, %v39_v0  ;;  %v42_v4 = vld [vmem:[#allocation4 + $0x8] sm:$0xff] }
  0x27   :  { %v44_v5 = vmul.f32 %v42_v4, %v40_v2 }
  0x28   :  { %v46_v6 = vsel %vm45_vm0, %v43_v3, 0.0 }
  0x29   :  { %47 = vadd.xlane.f32.xlu0 %v46_v6  ;;  %v49_v7 = vsel %vm45_vm0, %v44_v5, 0.0 }
  0x2d   :  { %50 = vadd.xlane.f32.xlu0 %v49_v7 }
  0xb6   :  { %v48_v8 = vpop.xlane.xlu0 %47 }
  0xb7   :  { %53 = vst.msk [vmem:[%s164_s2] sm:$0xff] %vm52_vm1, %v48_v8 }
  0xba   :  { %v51_v9 = vpop.xlane.xlu0 %50 }
  0xbb   :  { %54 = vst.msk [vmem:[%s164_s2 + $0x8] sm:$0xff] %vm52_vm1, %v51_v9 }
  0xbc   :  { %59 = vsyncpa [#allocation3], 1 }
  0xbd   :  { %60 = vsyncpa [#allocation5], 1 }

</bundles_post_ra>
